<compile_context>
chip_gen: v6e
topology: v6e:2x2x1
jax: 0.10.0
libtpu: 0.0.40
codegen_flags: <defaults>
</compile_context>

<pallas_src>
import functools

import numpy as np

import jax
import jax.numpy as jnp
from jax import lax
from jax.experimental import pallas as pl
from jax.experimental.pallas import tpu as pltpu


def _round_up(v, m):
    return ((v + m - 1) // m) * m


def _pick_tile(np_dim):
    # Largest of (512, 256, 128) that divides the 128-aligned Np — no extra
    # padding beyond lane alignment, ~85% of HBM roofline at 512 per the sweep.
    for t in (512, 256, 128):
        if np_dim % t == 0:
            return t
    return 128


# ---------------------------------------------------------------------------
# Kernel 1 (prologue, O(N)):  h = MLP(x), sq = ||h_i||^2
# ---------------------------------------------------------------------------
def _embed_kernel(x_ref, w1_ref, b1_ref, w2_ref, b2_ref, h_ref, sq_ref):
    # bf16 operands, f32 accumulation on the MXU.
    h1 = jnp.dot(x_ref[...], w1_ref[...],
                 preferred_element_type=jnp.float32) + b1_ref[...]
    h1 = jnp.maximum(h1, 0.0)                                     # [tr, Hp] f32
    h = jnp.dot(h1.astype(jnp.bfloat16), w2_ref[...],
                preferred_element_type=jnp.float32) + b2_ref[...]  # [tr, Ep] f32
    # Squared row norms computed once here (O(N*E)); the O(N^2) kernel only
    # does broadcast adds of these — no Gram-diagonal where / full reductions.
    sq_ref[...] = jnp.sum(h * h, axis=1, keepdims=True)            # [tr, 1] f32
    h_ref[...] = h.astype(h_ref.dtype)                             # bf16


# ---------------------------------------------------------------------------
# Kernel 2 (tiled, O(N^2)):  pred tile (i,j) from h row-block i / col-block j
# ---------------------------------------------------------------------------
def _dist_tile_kernel(hi_ref, hj_ref, sqi_ref, sqj_ref, pred_ref):
    # Gram tile via NT contraction (no transpose materialized), f32 MXU acc.
    gram = lax.dot_general(hi_ref[...], hj_ref[...],
                           dimension_numbers=(((1,), (1,)), ((), ())),
                           preferred_element_type=jnp.float32)     # [tm, tn]
    d2 = jnp.maximum(sqi_ref[...] + sqj_ref[...] - 2.0 * gram, 0.0)
    dist = jnp.sqrt(d2)                                            # EUP slot

    i = pl.program_id(0)
    j = pl.program_id(1)

    @pl.when(i != j)
    def _():
        pred_ref[...] = dist.astype(pred_ref.dtype)

    # Diagonal zeroing only on diagonal tiles: saves the iota/compare/where
    # VALU work on every off-diagonal tile (the binding slot of this epilogue).
    @pl.when(i == j)
    def _():
        row = lax.broadcasted_iota(jnp.int32, dist.shape, 0)
        col = lax.broadcasted_iota(jnp.int32, dist.shape, 1)
        pred_ref[...] = jnp.where(row == col, 0.0, dist).astype(pred_ref.dtype)


def prepare_model3d_params(w1, b1, w2, b2):
    """Pad weights to lane/MXU-aligned sizes and cast matmul operands to bf16.
    Done ONCE, outside the per-call hot path (weights are static)."""
    F, H = w1.shape
    E = w2.shape[1]
    Fp, Hp, Ep = _round_up(F, 128), _round_up(H, 128), _round_up(E, 128)
    w1p = jnp.pad(w1, ((0, Fp - F), (0, Hp - H))).astype(jnp.bfloat16)
    b1p = jnp.pad(b1, ((0, 0), (0, Hp - H))).astype(jnp.float32)
    w2p = jnp.pad(w2, ((0, Hp - H), (0, Ep - E))).astype(jnp.bfloat16)
    b2p = jnp.pad(b2, ((0, 0), (0, Ep - E))).astype(jnp.float32)
    return (w1p, b1p, w2p, b2p)


def model3d_forward(x, prepared_params):
    """Synthetic model3d hot path.  Returns the PADDED [Np, Np] f32 pred
    matrix; the top-left [N, N] block is the valid distance matrix (diag
    exactly 0).  Rows/cols >= N are padding artifacts and must not be read
    (the wrapper only gathers the valid region)."""
    w1p, b1p, w2p, b2p = prepared_params
    N, F = x.shape
    Fp, Hp = w1p.shape
    Ep = w2p.shape[1]

    Np = _round_up(N, 128)
    tile = _pick_tile(Np)
    n_tiles = Np // tile

    xp = jnp.pad(x, ((0, Np - N), (0, Fp - F))).astype(jnp.bfloat16)

    # ---- prologue: h (bf16) + squared row norms, tiled over rows ------------
    embed_cost = pl.CostEstimate(
        flops=2 * Np * (Fp * Hp + Hp * Ep),
        transcendentals=0,
        bytes_accessed=(2 * Np * Fp + 2 * Fp * Hp + 4 * Hp + 2 * Hp * Ep
                        + 4 * Ep + 2 * Np * Ep + 4 * Np))
    h, sq_col = pl.pallas_call(
        _embed_kernel,
        grid=(n_tiles,),
        out_shape=(jax.ShapeDtypeStruct((Np, Ep), jnp.bfloat16),
                   jax.ShapeDtypeStruct((Np, 1), jnp.float32)),
        in_specs=[
            pl.BlockSpec((tile, Fp), lambda r: (r, 0)),
            pl.BlockSpec((Fp, Hp), lambda r: (0, 0)),
            pl.BlockSpec((1, Hp), lambda r: (0, 0)),
            pl.BlockSpec((Hp, Ep), lambda r: (0, 0)),
            pl.BlockSpec((1, Ep), lambda r: (0, 0)),
        ],
        out_specs=(pl.BlockSpec((tile, Ep), lambda r: (r, 0)),
                   pl.BlockSpec((tile, 1), lambda r: (r, 0))),
        compiler_params=pltpu.CompilerParams(
            dimension_semantics=("parallel",),
            vmem_limit_bytes=32 * 1024 * 1024),
        cost_estimate=embed_cost,
    )(xp, w1p, b1p, w2p, b2p)

    # Row orientation of the norms for lane-broadcast in the tiles; O(Np) only.
    sq_row = sq_col.reshape(1, Np)

    # ---- tiled pairwise-distance kernel -------------------------------------
    tile_vmem = (2 * tile * tile * 4          # double-buffered pred tile (f32)
                 + 4 * tile * Ep * 2          # double-buffered h row/col tiles
                 + 4 * tile * 4               # sq tiles
                 + 4 * tile * tile * 4)       # f32 temporaries (gram/d2/dist)
    vmem_limit = int(min(max(2 * tile_vmem, 32 * 1024 * 1024),
                         48 * 1024 * 1024))   # stays under v7x's 64 MiB

    dist_cost = pl.CostEstimate(
        flops=2 * Np * Np * Ep,
        transcendentals=Np * Np,
        bytes_accessed=2 * 2 * Np * Ep * n_tiles + 2 * 4 * Np * n_tiles
                       + 4 * Np * Np)
    pred_padded = pl.pallas_call(
        _dist_tile_kernel,
        grid=(n_tiles, n_tiles),
        out_shape=jax.ShapeDtypeStruct((Np, Np), jnp.float32),
        in_specs=[
            pl.BlockSpec((tile, Ep), lambda i, j: (i, 0)),   # h row block
            pl.BlockSpec((tile, Ep), lambda i, j: (j, 0)),   # h col block
            pl.BlockSpec((tile, 1), lambda i, j: (i, 0)),    # sq (column)
            pl.BlockSpec((1, tile), lambda i, j: (0, j)),    # sq (row)
        ],
        out_specs=pl.BlockSpec((tile, tile), lambda i, j: (i, j)),
        compiler_params=pltpu.CompilerParams(
            dimension_semantics=("parallel", "parallel"),
            vmem_limit_bytes=vmem_limit),
        cost_estimate=dist_cost,
    )(h, h, sq_col, sq_row)
    # TODO(synk): if xprof still shows the pred writeback exposed on v5e/v6e,
    # add pipeline_mode=pl.Buffered(3) on the out_spec and/or emit bf16 pred.

    return pred_padded


# ---------------------------------------------------------------------------
# TransformPred3D.forward equivalent — fully jitted, no host round-trip.
# ---------------------------------------------------------------------------
@functools.partial(jax.jit, static_argnames=("target_id",))
def transform_pred_3d(x, props, prepared_params, target_id=0):
    """Mirrors TransformPred3D.forward:
       pred        = model3d(batch-of-one)   (Pallas kernels, detached)
       dist_index  = nonzero(pred).T         -> static off-diagonal index set
       dist_weight = pred[nonzero(pred)]     -> gather of the valid region
       y           = props[target_id]
    """
    pred_padded = lax.stop_gradient(model3d_forward(x, prepared_params))

    N = x.shape[0]
    # torch.nonzero has a data-dependent output shape; since the diagonal is
    # exactly 0 by construction and off-diagonal distances are > 0 for distinct
    # embeddings, the nonzero set equals the static off-diagonal index set
    # (row-major, same order torch.nonzero produces).  Reads only the valid
    # [:N,:N] region of the padded pred — no extra [:N,:N] HBM copy.
    # TODO(synk): exact-duplicate embeddings (distance == 0) would be dropped
    # by torch.nonzero but are kept here with weight 0.
    rows_np, cols_np = np.nonzero(~np.eye(N, dtype=bool))
    rows = jnp.asarray(rows_np, dtype=jnp.int32)
    cols = jnp.asarray(cols_np, dtype=jnp.int32)
    dist_index = jnp.stack([rows, cols], axis=0)               # [2, N*(N-1)]
    dist_weight = pred_padded[rows, cols]                      # [N*(N-1)]
    y = props[target_id]

    return {"dist_index": dist_index, "dist_weight": dist_weight,
            "y": y, "pred_padded": pred_padded}


if __name__ == "__main__":
    key = jax.random.PRNGKey(0)
    N, F, H, E = 16, 32, 32, 32  # nodes, feature dim, hidden, embedding dim

    k_x, k_w1, k_b1, k_w2, k_b2, k_p = jax.random.split(key, 6)
    x = jax.random.normal(k_x, (N, F), dtype=jnp.float32)
    w1 = jax.random.normal(k_w1, (F, H), dtype=jnp.float32) * 0.1
    b1 = jax.random.normal(k_b1, (1, H), dtype=jnp.float32) * 0.1
    w2 = jax.random.normal(k_w2, (H, E), dtype=jnp.float32) * 0.1
    b2 = jax.random.normal(k_b2, (1, E), dtype=jnp.float32) * 0.1
    props = jax.random.normal(k_p, (4,), dtype=jnp.float32)    # data.props

    # Weight padding / bf16 cast hoisted out of the hot path (done once).
    prepared = prepare_model3d_params(w1, b1, w2, b2)

    out = transform_pred_3d(x, props, prepared, target_id=0)
    jax.block_until_ready(out)

    pred = out["pred_padded"][:N, :N]   # sliced only for verification

    # --- pure-JAX reference with the same bf16-operand / f32-accum recipe ----
    h1 = jnp.maximum(
        jnp.dot(x.astype(jnp.bfloat16), w1.astype(jnp.bfloat16),
                preferred_element_type=jnp.float32) + b1, 0.0)
    h = jnp.dot(h1.astype(jnp.bfloat16), w2.astype(jnp.bfloat16),
                preferred_element_type=jnp.float32) + b2
    hb = h.astype(jnp.bfloat16)
    gram = lax.dot_general(hb, hb, (((1,), (1,)), ((), ())),
                           preferred_element_type=jnp.float32)
    sq = jnp.sum(h * h, axis=1, keepdims=True)
    d2 = jnp.maximum(sq + sq.T - 2.0 * gram, 0.0)
    ref = jnp.sqrt(d2) * (1.0 - jnp.eye(N, dtype=jnp.float32))

    assert pred.shape == (N, N)
    assert jnp.allclose(pred, ref, atol=2e-3, rtol=2e-3), "pred mismatch"

    dist_index = out["dist_index"]
    dist_weight = out["dist_weight"]
    assert dist_index.shape == (2, N * (N - 1))
    assert dist_weight.shape == (N * (N - 1),)
    assert bool(jnp.all(dist_weight > 0.0))
    assert bool(jnp.all(dist_weight == pred[dist_index[0], dist_index[1]]))
    assert out["y"].shape == ()

    print("KERNEL_OK")
</pallas_src>

<mosaic_0001>
module attributes {stable_mosaic.version = 11 : i64} {
  func.func @_embed_kernel(%arg0: i32, %arg1: memref<128x128xbf16, #tpu.memory_space<vmem>>, %arg2: memref<128x128xbf16, #tpu.memory_space<vmem>>, %arg3: memref<1x128xf32, #tpu.memory_space<vmem>>, %arg4: memref<128x128xbf16, #tpu.memory_space<vmem>>, %arg5: memref<1x128xf32, #tpu.memory_space<vmem>>, %arg6: memref<128x128xbf16, #tpu.memory_space<vmem>>, %arg7: memref<128x1xf32, #tpu.memory_space<vmem>>) attributes {dimension_semantics = [#tpu.dimension_semantics<parallel>], iteration_bounds = array<i64: 1>, scalar_prefetch = 0 : i64, scratch_operands = 0 : i64, tpu.core_type = #tpu.core_type<tc>, window_params = [{transform_indices = @transform_0, window_bounds = array<i64: 128, 128>}, {pipeline_mode = #tpu.pipeline_mode<synchronous>, transform_indices = @transform_1, window_bounds = array<i64: 128, 128>}, {pipeline_mode = #tpu.pipeline_mode<synchronous>, transform_indices = @transform_2, window_bounds = array<i64: 1, 128>}, {pipeline_mode = #tpu.pipeline_mode<synchronous>, transform_indices = @transform_3, window_bounds = array<i64: 128, 128>}, {pipeline_mode = #tpu.pipeline_mode<synchronous>, transform_indices = @transform_4, window_bounds = array<i64: 1, 128>}, {transform_indices = @transform_5, window_bounds = array<i64: 128, 128>}, {transform_indices = @transform_6, window_bounds = array<i64: 128, 1>}]} {
    %c0 = arith.constant 0 : index
    %c0_0 = arith.constant 0 : index
    %0 = vector.load %arg1[%c0, %c0_0] : memref<128x128xbf16, #tpu.memory_space<vmem>>, vector<128x128xbf16>
    %c0_1 = arith.constant 0 : index
    %c0_2 = arith.constant 0 : index
    %1 = vector.load %arg2[%c0_1, %c0_2] : memref<128x128xbf16, #tpu.memory_space<vmem>>, vector<128x128xbf16>
    %cst = arith.constant dense<0.000000e+00> : vector<128x128xf32>
    %2 = tpu.matmul %0, %1, %cst {dimension_numbers = #tpu.dot_dimension_numbers<[1], [0], [0], [1], [0, 0, 1, 1], [], []>} : vector<128x128xbf16>, vector<128x128xbf16>, vector<128x128xf32> -> vector<128x128xf32>
    %c0_3 = arith.constant 0 : index
    %c0_4 = arith.constant 0 : index
    %3 = vector.load %arg3[%c0_3, %c0_4] : memref<1x128xf32, #tpu.memory_space<vmem>>, vector<1x128xf32>
    %4 = vector.broadcast %3 : vector<1x128xf32> to vector<128x128xf32>
    %5 = arith.addf %2, %4 : vector<128x128xf32>
    %cst_5 = arith.constant 0.000000e+00 : f32
    %6 = vector.broadcast %cst_5 : f32 to vector<128x128xf32>
    %7 = arith.maximumf %5, %6 : vector<128x128xf32>
    %8 = arith.truncf %7 : vector<128x128xf32> to vector<128x128xbf16>
    %c0_6 = arith.constant 0 : index
    %c0_7 = arith.constant 0 : index
    %9 = vector.load %arg4[%c0_6, %c0_7] : memref<128x128xbf16, #tpu.memory_space<vmem>>, vector<128x128xbf16>
    %cst_8 = arith.constant dense<0.000000e+00> : vector<128x128xf32>
    %10 = tpu.matmul %8, %9, %cst_8 {dimension_numbers = #tpu.dot_dimension_numbers<[1], [0], [0], [1], [0, 0, 1, 1], [], []>} : vector<128x128xbf16>, vector<128x128xbf16>, vector<128x128xf32> -> vector<128x128xf32>
    %c0_9 = arith.constant 0 : index
    %c0_10 = arith.constant 0 : index
    %11 = vector.load %arg5[%c0_9, %c0_10] : memref<1x128xf32, #tpu.memory_space<vmem>>, vector<1x128xf32>
    %12 = vector.broadcast %11 : vector<1x128xf32> to vector<128x128xf32>
    %13 = arith.addf %10, %12 : vector<128x128xf32>
    %14 = arith.mulf %13, %13 : vector<128x128xf32>
    %cst_11 = arith.constant dense<0.000000e+00> : vector<128xf32>
    %15 = vector.multi_reduction <add>, %14, %cst_11 [1] : vector<128x128xf32> to vector<128xf32>
    %16 = vector.shape_cast %15 : vector<128xf32> to vector<128x1xf32>
    %c0_12 = arith.constant 0 : index
    %c0_13 = arith.constant 0 : index
    %17 = vector.load %arg7[%c0_12, %c0_13] : memref<128x1xf32, #tpu.memory_space<vmem>>, vector<128x1xf32>
    tpu.vector_store %arg7[%c0_12, %c0_13], %16 {strides = array<i32>} : memref<128x1xf32, #tpu.memory_space<vmem>>, vector<128x1xf32>,
    %18 = arith.truncf %13 : vector<128x128xf32> to vector<128x128xbf16>
    %c0_14 = arith.constant 0 : index
    %c0_15 = arith.constant 0 : index
    %19 = vector.load %arg6[%c0_14, %c0_15] : memref<128x128xbf16, #tpu.memory_space<vmem>>, vector<128x128xbf16>
    tpu.vector_store %arg6[%c0_14, %c0_15], %18 {strides = array<i32>} : memref<128x128xbf16, #tpu.memory_space<vmem>>, vector<128x128xbf16>,
    return
  }
  func.func @transform_0(%arg0: i32) -> (i32, i32) {
    %c0_i32 = arith.constant 0 : i32
    %c0_i32_0 = arith.constant 0 : i32
    return %arg0, %c0_i32 : i32, i32
  }
  func.func @transform_1(%arg0: i32) -> (i32, i32) {
    %c0_i32 = arith.constant 0 : i32
    %c0_i32_0 = arith.constant 0 : i32
    %c0_i32_1 = arith.constant 0 : i32
    return %c0_i32, %c0_i32_0 : i32, i32
  }
  func.func @transform_2(%arg0: i32) -> (i32, i32) {
    %c0_i32 = arith.constant 0 : i32
    %c0_i32_0 = arith.constant 0 : i32
    %c0_i32_1 = arith.constant 0 : i32
    return %c0_i32, %c0_i32_0 : i32, i32
  }
  func.func @transform_3(%arg0: i32) -> (i32, i32) {
    %c0_i32 = arith.constant 0 : i32
    %c0_i32_0 = arith.constant 0 : i32
    %c0_i32_1 = arith.constant 0 : i32
    return %c0_i32, %c0_i32_0 : i32, i32
  }
  func.func @transform_4(%arg0: i32) -> (i32, i32) {
    %c0_i32 = arith.constant 0 : i32
    %c0_i32_0 = arith.constant 0 : i32
    %c0_i32_1 = arith.constant 0 : i32
    return %c0_i32, %c0_i32_0 : i32, i32
  }
  func.func @transform_5(%arg0: i32) -> (i32, i32) {
    %c0_i32 = arith.constant 0 : i32
    %c0_i32_0 = arith.constant 0 : i32
    return %arg0, %c0_i32 : i32, i32
  }
  func.func @transform_6(%arg0: i32) -> (i32, i32) {
    %c0_i32 = arith.constant 0 : i32
    %c0_i32_0 = arith.constant 0 : i32
    return %arg0, %c0_i32 : i32, i32
  }
}

module attributes {stable_mosaic.version = 11 : i64} {
  func.func @_dist_tile_kernel(%arg0: i32, %arg1: i32, %arg2: memref<128x128xbf16, #tpu.memory_space<vmem>>, %arg3: memref<128x128xbf16, #tpu.memory_space<vmem>>, %arg4: memref<128x1xf32, #tpu.memory_space<vmem>>, %arg5: memref<1x128xf32, #tpu.memory_space<vmem>>, %arg6: memref<128x128xf32, #tpu.memory_space<vmem>>) attributes {dimension_semantics = [#tpu.dimension_semantics<parallel>, #tpu.dimension_semantics<parallel>], iteration_bounds = array<i64: 1, 1>, scalar_prefetch = 0 : i64, scratch_operands = 0 : i64, tpu.core_type = #tpu.core_type<tc>, window_params = [{transform_indices = @transform_0, window_bounds = array<i64: 128, 128>}, {transform_indices = @transform_1, window_bounds = array<i64: 128, 128>}, {transform_indices = @transform_2, window_bounds = array<i64: 128, 1>}, {transform_indices = @transform_3, window_bounds = array<i64: 1, 128>}, {transform_indices = @transform_4, window_bounds = array<i64: 128, 128>}]} {
    %c0 = arith.constant 0 : index
    %c0_0 = arith.constant 0 : index
    %0 = vector.load %arg2[%c0, %c0_0] : memref<128x128xbf16, #tpu.memory_space<vmem>>, vector<128x128xbf16>
    %c0_1 = arith.constant 0 : index
    %c0_2 = arith.constant 0 : index
    %1 = vector.load %arg3[%c0_1, %c0_2] : memref<128x128xbf16, #tpu.memory_space<vmem>>, vector<128x128xbf16>
    %cst = arith.constant dense<0.000000e+00> : vector<128x128xf32>
    %2 = tpu.matmul %0, %1, %cst {dimension_numbers = #tpu.dot_dimension_numbers<[1], [1], [0], [0], [0, 0, 1, 0], [], []>} : vector<128x128xbf16>, vector<128x128xbf16>, vector<128x128xf32> -> vector<128x128xf32>
    %c0_3 = arith.constant 0 : index
    %c0_4 = arith.constant 0 : index
    %3 = vector.load %arg4[%c0_3, %c0_4] : memref<128x1xf32, #tpu.memory_space<vmem>>, vector<128x1xf32>
    %c0_5 = arith.constant 0 : index
    %c0_6 = arith.constant 0 : index
    %4 = vector.load %arg5[%c0_5, %c0_6] : memref<1x128xf32, #tpu.memory_space<vmem>>, vector<1x128xf32>
    %5 = vector.broadcast %3 : vector<128x1xf32> to vector<128x128xf32>
    %6 = vector.broadcast %4 : vector<1x128xf32> to vector<128x128xf32>
    %7 = arith.addf %5, %6 : vector<128x128xf32>
    %cst_7 = arith.constant 2.000000e+00 : f32
    %8 = vector.broadcast %cst_7 : f32 to vector<128x128xf32>
    %9 = arith.mulf %8, %2 : vector<128x128xf32>
    %10 = arith.subf %7, %9 : vector<128x128xf32>
    %cst_8 = arith.constant 0.000000e+00 : f32
    %11 = vector.broadcast %cst_8 : f32 to vector<128x128xf32>
    %12 = arith.maximumf %10, %11 : vector<128x128xf32>
    %13 = math.sqrt %12 : vector<128x128xf32>
    %14 = arith.cmpi ne, %arg0, %arg1 : i32
    %15 = arith.extui %14 : i1 to i32
    %c0_i32 = arith.constant 0 : i32
    %16 = arith.cmpi ne, %15, %c0_i32 : i32
    scf.if %16 {
      %c0_10 = arith.constant 0 : index
      %c0_11 = arith.constant 0 : index
      %20 = vector.load %arg6[%c0_10, %c0_11] : memref<128x128xf32, #tpu.memory_space<vmem>>, vector<128x128xf32>
      tpu.vector_store %arg6[%c0_10, %c0_11], %13 {strides = array<i32>} : memref<128x128xf32, #tpu.memory_space<vmem>>, vector<128x128xf32>,
    } else {
    }
    %17 = arith.cmpi eq, %arg0, %arg1 : i32
    %18 = arith.extui %17 : i1 to i32
    %c0_i32_9 = arith.constant 0 : i32
    %19 = arith.cmpi ne, %18, %c0_i32_9 : i32
    scf.if %19 {
      %20 = tpu.iota {dimensions = array<i32: 0>} : vector<128x128xi32>
      %21 = tpu.iota {dimensions = array<i32: 1>} : vector<128x128xi32>
      %22 = arith.cmpi eq, %20, %21 : vector<128x128xi32>
      %cst_10 = arith.constant 0.000000e+00 : f32
      %23 = vector.broadcast %cst_10 : f32 to vector<128x128xf32>
      %24 = arith.select %22, %23, %13 : vector<128x128xi1>, vector<128x128xf32>
      %c0_11 = arith.constant 0 : index
      %c0_12 = arith.constant 0 : index
      %25 = vector.load %arg6[%c0_11, %c0_12] : memref<128x128xf32, #tpu.memory_space<vmem>>, vector<128x128xf32>
      tpu.vector_store %arg6[%c0_11, %c0_12], %24 {strides = array<i32>} : memref<128x128xf32, #tpu.memory_space<vmem>>, vector<128x128xf32>,
    } else {
    }
    return
  }
  func.func @transform_0(%arg0: i32, %arg1: i32) -> (i32, i32) {
    %c0_i32 = arith.constant 0 : i32
    %c0_i32_0 = arith.constant 0 : i32
    return %arg0, %c0_i32 : i32, i32
  }
  func.func @transform_1(%arg0: i32, %arg1: i32) -> (i32, i32) {
    %c0_i32 = arith.constant 0 : i32
    %c0_i32_0 = arith.constant 0 : i32
    return %arg1, %c0_i32 : i32, i32
  }
  func.func @transform_2(%arg0: i32, %arg1: i32) -> (i32, i32) {
    %c0_i32 = arith.constant 0 : i32
    %c0_i32_0 = arith.constant 0 : i32
    return %arg0, %c0_i32 : i32, i32
  }
  func.func @transform_3(%arg0: i32, %arg1: i32) -> (i32, i32) {
    %c0_i32 = arith.constant 0 : i32
    %c0_i32_0 = arith.constant 0 : i32
    return %c0_i32, %arg1 : i32, i32
  }
  func.func @transform_4(%arg0: i32, %arg1: i32) -> (i32, i32) {
    %c0_i32 = arith.constant 0 : i32
    return %arg0, %arg1 : i32, i32
  }
}

</mosaic_0001>

<bundles_post_ra>
// kernel: transform_pred_3d.3
= control target key start
LH: loop header
LB: loop body
LE: loop exit
PB: predicated region body
PF: predicated region fallthrough
CT: control target
= control target key end

     0   :  { %v749_v1 = vmov 0   ;;  %v546_v43 = vlaneseq  ;;  %s1226_s1 = inlined_call_operand.vmem [shape: bf16[128,128], index: 1, kind: input, shape index: {}, may-alias: {0,1}]   ;;  %s1227_s0 = inlined_call_operand.vmem [shape: bf16[128,128], index: 0, kind: input, shape index: {}, may-alias: {0,1}]   ;;  %s1228_s2 = inlined_call_operand.vmem [shape: f32[128,1], index: 2, kind: input, shape index: {}]   ;;  %s1229_s3 = inlined_call_operand.vmem [shape: f32[1,128], index: 3, kind: input, shape index: {}]   ;;  %s1230_s4 = inlined_call_operand.vmem [shape: f32[128,128], index: 4, kind: output, shape index: {}]  }
   0x1   :  { %v701_v0 = vld [vmem:[%s1226_s1 + $0x38] sm:$0xff]   ;;  %700 = vset.pattern.permute.xlu1 %v749_v1  ;;  %699 = vset.pattern.permute.xlu0 %v749_v1  ;;  %v702_v2 = vld [vmem:[%s1226_s1 + $0x30] sm:$0xff]   ;;  %v703_v3 = vld [vmem:[%s1226_s1 + $0x28] sm:$0xff]  }
   0x2   :  { %650 = vmatprep.subr.bf16.mxu0 %v701_v0  ;;  %682 = vmatprep.subr.bf16.mxu1 %v701_v0  ;;  %v709_v4 = vld [vmem:[%s1227_s0] sm:$0xff]   ;;  %v245_v7 = vld [vmem:[%s1228_s2 + $0x10] sm:$0xff]  ;;  %v246_v9 = vld [vmem:[%s1228_s2 + $0x18] sm:$0xff]  ;;  %v877_v49 = vshrl.u32 %v546_v43, 7 }
   0x3   :  { %651 = vmatpush3.bf16.xpose.msra.mxu0 %v701_v0  ;;  %690 = vmatpush3.bf16.xpose.msra.mxu1 %v701_v0  ;;  %v710_v5 = vld [vmem:[%s1227_s0 + $0x20] sm:$0xff]   ;;  %v244_v10 = vld [vmem:[%s1228_s2 + $0x8] sm:$0xff]  ;;  %v705_v13 = vld [vmem:[%s1226_s1 + $0x18] sm:$0xff]  }
   0x4   :  { %652 = vmatprep.subr.bf16.mxu0 %v702_v2  ;;  %683 = vmatprep.subr.bf16.mxu1 %v702_v2  ;;  %v704_v6 = vld [vmem:[%s1226_s1 + $0x20] sm:$0xff]   ;;  %v248_v11 = vld [vmem:[%s1228_s2 + $0x28] sm:$0xff]  ;;  %v250_v14 = vld [vmem:[%s1228_s2 + $0x38] sm:$0xff] }
   0x5   :  { %666 = vmatprep.mubr.bf16.mxu0 %v709_v4  ;;  %674 = vmatprep.mubr.bf16.mxu1 %v710_v5  ;;  %v243_v8 = vld [vmem:[%s1228_s2] sm:$0xff]  ;;  %v249_v15 = vld [vmem:[%s1228_s2 + $0x30] sm:$0xff]  ;;  %v252_v16 = vld [vmem:[%s1228_s2 + $0x48] sm:$0xff]  ;;  %v896_v4 = vadd.s32 16, %v877_v49  ;;  %v898_v5 = vand.u32 127, %v546_v43 }
   0x6   :  { %272 = vperm.xlu1 %700, %v245_v7   ;;  %262 = vperm.xlu0 %699, %v243_v8   ;;  %v247_v12 = vld [vmem:[%s1228_s2 + $0x20] sm:$0xff]  ;;  %v706_v18 = vld [vmem:[%s1226_s1 + $0x10] sm:$0xff]   ;;  %v254_v19 = vld [vmem:[%s1228_s2 + $0x58] sm:$0xff] }
   0x7   :  { %v251_v17 = vld [vmem:[%s1228_s2 + $0x40] sm:$0xff]  ;;  %v253_v20 = vld [vmem:[%s1228_s2 + $0x50] sm:$0xff]  ;;  %v256_v21 = vld [vmem:[%s1228_s2 + $0x68] sm:$0xff]  ;;  %vm567_vm0 = vcmp.eq.s32.totalorder %v896_v4, %v898_v5  ;;  %vm565_vm7 = vcmp.eq.s32.totalorder %v877_v49, %v898_v5 }
   0x8   :  { %v255_v22 = vld [vmem:[%s1228_s2 + $0x60] sm:$0xff]  ;;  %v707_v23 = vld [vmem:[%s1226_s1 + $0x8] sm:$0xff]   ;;  %v258_v24 = vld [vmem:[%s1228_s2 + $0x78] sm:$0xff] }
   0x9   :  { %v257_v25 = vld [vmem:[%s1228_s2 + $0x70] sm:$0xff]  ;;  %v708_v26 = vld [vmem:[%s1226_s1] sm:$0xff]   ;;  %v711_v27 = vld [vmem:[%s1227_s0 + $0x8] sm:$0xff]  }
   0xa   :  { %277 = vperm.xlu1 %700, %v246_v9   ;;  %267 = vperm.xlu0 %699, %v244_v10   ;;  %v712_v28 = vld [vmem:[%s1227_s0 + $0x28] sm:$0xff]   ;;  %v713_v29 = vld [vmem:[%s1227_s0 + $0x10] sm:$0xff]   ;;  %v715_v31 = vld [vmem:[%s1227_s0 + $0x18] sm:$0xff]  }
   0xb   :  { %653 = vmatpush3.bf16.xpose.msra.mxu0 %v702_v2  ;;  %691 = vmatpush3.bf16.xpose.msra.mxu1 %v702_v2  ;;  %v714_v30 = vld [vmem:[%s1227_s0 + $0x30] sm:$0xff]   ;;  %v716_v32 = vld [vmem:[%s1227_s0 + $0x38] sm:$0xff]   ;;  %v874_v44 = vld [vmem:[%s1229_s3] ss:$0 sm:$0xff] }
   0xc   :  { %654 = vmatprep.subr.bf16.mxu0 %v703_v3  ;;  %684 = vmatprep.subr.bf16.mxu1 %v703_v3 }
   0xe   :  { %287 = vperm.xlu1 %700, %v248_v11   ;;  %282 = vperm.xlu0 %699, %v247_v12  }
  0x12   :  { %297 = vperm.xlu1 %700, %v250_v14   ;;  %292 = vperm.xlu0 %699, %v249_v15   ;;  %v906_v14 = vadd.s32 80, %v877_v49 }
  0x13   :  { %655 = vmatpush3.bf16.xpose.msra.mxu0 %v703_v3  ;;  %692 = vmatpush3.bf16.xpose.msra.mxu1 %v703_v3 }
  0x14   :  { %656 = vmatprep.subr.bf16.mxu0 %v704_v6  ;;  %685 = vmatprep.subr.bf16.mxu1 %v704_v6  ;;  %vm575_vm2 = vcmp.eq.s32.totalorder %v906_v14, %v898_v5 }
  0x16   :  { %307 = vperm.xlu1 %700, %v252_v16   ;;  %302 = vperm.xlu0 %699, %v251_v17  }
  0x1a   :  { %317 = vperm.xlu1 %700, %v254_v19   ;;  %312 = vperm.xlu0 %699, %v253_v20  }
  0x1b   :  { %657 = vmatpush3.bf16.xpose.msra.mxu0 %v704_v6  ;;  %693 = vmatpush3.bf16.xpose.msra.mxu1 %v704_v6 }
  0x1c   :  { %658 = vmatprep.subr.bf16.mxu0 %v705_v13  ;;  %686 = vmatprep.subr.bf16.mxu1 %v705_v13 }
  0x1e   :  { %327 = vperm.xlu1 %700, %v256_v21   ;;  %322 = vperm.xlu0 %699, %v255_v22   ;;  %v912_v21 = vadd.s32 64, %v877_v49  ;;  %v916_v22 = vadd.s32 24, %v877_v49 }
  0x20   :  { %vm573_vm9 = vcmp.eq.s32.totalorder %v912_v21, %v898_v5  ;;  %vm568_vm13 = vcmp.eq.s32.totalorder %v916_v22, %v898_v5 }
  0x22   :  { %337 = vperm.xlu1 %700, %v258_v24   ;;  %332 = vperm.xlu0 %699, %v257_v25   ;;  %v922_v24 = vadd.s32 8, %v877_v49 }
  0x23   :  { %659 = vmatpush3.bf16.xpose.msra.mxu0 %v705_v13  ;;  %694 = vmatpush3.bf16.xpose.msra.mxu1 %v705_v13 }
  0x24   :  { %660 = vmatprep.subr.bf16.mxu0 %v706_v18  ;;  %687 = vmatprep.subr.bf16.mxu1 %v706_v18 }
  0x2b   :  { %661 = vmatpush3.bf16.xpose.msra.mxu0 %v706_v18  ;;  %695 = vmatpush3.bf16.xpose.msra.mxu1 %v706_v18 }
  0x2c   :  { %662 = vmatprep.subr.bf16.mxu0 %v707_v23  ;;  %688 = vmatprep.subr.bf16.mxu1 %v707_v23 }
  0x33   :  { %663 = vmatpush3.bf16.xpose.msra.mxu0 %v707_v23  ;;  %696 = vmatpush3.bf16.xpose.msra.mxu1 %v707_v23  ;;  %v919_v23 = vadd.s32 88, %v877_v49 }
  0x34   :  { %664 = vmatprep.subr.bf16.mxu0 %v708_v26  ;;  %689 = vmatprep.subr.bf16.mxu1 %v708_v26 }
  0x35   :  { %vm576_vm12 = vcmp.eq.s32.totalorder %v919_v23, %v898_v5 }
  0x3b   :  { %665 = vmatpush3.bf16.xpose.msra.mxu0 %v708_v26  ;;  %697 = vmatpush3.bf16.xpose.msra.mxu1 %v708_v26 }
  0x42   :  { %667 = vmatmul.mubr.bf16.vlgmr.msra.gmra.mxu0 %v711_v27  ;;  %675 = vmatmul.mubr.bf16.vlgmr.msra.gmra.mxu1 %v712_v28 }
  0x43   :  { %670 = vmatprep.mubr.bf16.mxu0 %v713_v29  ;;  %678 = vmatprep.mubr.bf16.mxu1 %v714_v30 }
  0x4a   :  { %671 = vmatmul.mubr.bf16.gmra.mxu0 %v715_v31  ;;  %679 = vmatmul.mubr.bf16.gmra.mxu1 %v716_v32 }
  0x81   :  { %v263_v33 = vpop.permute.xlu0 %262  ;;  %v273_v34 = vpop.permute.xlu1 %272 }
  0x82   :  { %v348_v47 = vadd.f32 %v874_v44, %v273_v34  ;;  %v346_v51 = vadd.f32 %v874_v44, %v263_v33 }
  0x85   :  { %v268_v35 = vpop.permute.xlu0 %267  ;;  %v278_v36 = vpop.permute.xlu1 %277 }
  0x86   :  { %v349_v55 = vadd.f32 %v874_v44, %v278_v36  ;;  %v883_v56 = vadd.f32 %v874_v44, %v268_v35 }
  0x89   :  { %v283_v37 = vpop.permute.xlu0 %282  ;;  %v288_v38 = vpop.permute.xlu1 %287 }
  0x8a   :  { %v886_v57 = vadd.f32 %v874_v44, %v288_v38  ;;  %v890_v2 = vadd.f32 %v874_v44, %v283_v37 }
  0x8d   :  { %v293_v39 = vpop.permute.xlu0 %292  ;;  %v298_v40 = vpop.permute.xlu1 %297 }
  0x8e   :  { %v893_v3 = vadd.f32 %v874_v44, %v298_v40  ;;  %v352_v13 = vadd.f32 %v874_v44, %v293_v39  ;;  %v936_v39 = vadd.s32 72, %v877_v49 }
  0x91   :  { %v303_v41 = vpop.permute.xlu0 %302  ;;  %v308_v42 = vpop.permute.xlu1 %307 }
  0x92   :  { %v354_v58 = vadd.f32 %v874_v44, %v303_v41  ;;  %v355_v19 = vadd.f32 %v874_v44, %v308_v42  ;;  %v941_v41 = vadd.s32 48, %v877_v49  ;;  %v944_v42 = vadd.s32 112, %v877_v49 }
  0x95   :  { %v313_v45 = vpop.permute.xlu0 %312  ;;  %v318_v46 = vpop.permute.xlu1 %317 }
  0x96   :  { %v356_v52 = vadd.f32 %v874_v44, %v313_v45  ;;  %v357_v20 = vadd.f32 %v874_v44, %v318_v46 }
  0x99   :  { %v323_v61 = vpop.permute.xlu0 %322  ;;  %v328_v8 = vpop.permute.xlu1 %327 }
  0x9a   :  { %v929_v36 = vadd.f32 %v874_v44, %v328_v8  ;;  %v932_v37 = vadd.f32 %v874_v44, %v323_v61 }
  0x9d   :  { %v333_v27 = vpop.permute.xlu0 %332  ;;  %v338_v38 = vpop.permute.xlu1 %337 }
  0x9e   :  { %v360_v40 = vadd.f32 %v874_v44, %v333_v27 }
 0x102   :  { %v668_v48 = vpop.f32.mrf.mxu0  ;;  %v676_v50 = vpop.f32.mrf.mxu1 }
 0x103   :  { %v364_v53 = vmul.f32 2.0, %v668_v48  ;;  %v372_v54 = vmul.f32 2.0, %v676_v50 }
 0x104   :  { %v180_v59 = vpop.f32.mrf.mxu0  ;;  %v212_v60 = vpop.f32.mrf.mxu1 }
 0x105   :  { %v380_v62 = vsub.f32 %v348_v47, %v364_v53  ;;  %v388_v63 = vsub.f32 %v356_v52, %v372_v54  ;;  %v362_v0 = vmul.f32 2.0, %v180_v59  ;;  %v370_v1 = vmul.f32 2.0, %v212_v60 }
 0x106   :  { %v669_v6 = vpop.f32.mrf.mxu0  ;;  %v677_v7 = vpop.f32.mrf.mxu1  ;;  %v957_v54 = vadd.s32 32, %v877_v49 }
 0x107   :  { %v900_v9 = vmax.f32 %v380_v62, 0.0  ;;  %v902_v10 = vmax.f32 %v388_v63, 0.0  ;;  %v378_v11 = vsub.f32 %v346_v51, %v362_v0  ;;  %v386_v12 = vsub.f32 %v354_v58, %v370_v1 }
 0x108   :  { %v365_v15 = vmul.f32 2.0, %v669_v6  ;;  %v373_v16 = vmul.f32 2.0, %v677_v7  ;;  %v183_v17 = vpop.f32.mrf.mxu0  ;;  %v215_v18 = vpop.f32.mrf.mxu1  ;;  %v952_v51 = vadd.f32 %v874_v44, %v338_v38 }
 0x109   :  { %717 = vrsqrt.f32 %v900_v9  ;;  %v924_v28 = vmax.f32 %v378_v11, 0.0  ;;  %v926_v29 = vmax.f32 %v386_v12, 0.0  ;;  %v363_v32 = vmul.f32 2.0, %v183_v17 }
 0x10a   :  { %719 = vrsqrt.f32 %v902_v10  ;;  %v672_v25 = vpop.f32.mrf.mxu0  ;;  %v680_v26 = vpop.f32.mrf.mxu1  ;;  %v381_v30 = vsub.f32 %v349_v55, %v365_v15  ;;  %v389_v31 = vsub.f32 %v357_v20, %v373_v16  ;;  %v371_v33 = vmul.f32 2.0, %v215_v18 }
 0x10b   :  { %v368_v34 = vmul.f32 2.0, %v672_v25  ;;  %v376_v35 = vmul.f32 2.0, %v680_v26  ;;  %721 = vrsqrt.f32 %v924_v28  ;;  %v379_v47 = vsub.f32 %v883_v56, %v363_v32 }
 0x10c   :  { %723 = vrsqrt.f32 %v926_v29  ;;  %v196_v43 = vpop.f32.mrf.mxu0  ;;  %v946_v45 = vmax.f32 %v381_v30, 0.0  ;;  %v948_v46 = vmax.f32 %v389_v31, 0.0  ;;  %v387_v48 = vsub.f32 %v355_v19, %v371_v33  ;;  %v228_v50 = vpop.f32.mrf.mxu1 }
 0x10d   :  { %v384_v52 = vsub.f32 %v352_v13, %v368_v34  ;;  %v392_v53 = vsub.f32 %v360_v40, %v376_v35  ;;  %vm426_vm1 = vcmp.eq.f32.partialorder %v900_v9, inf  ;;  %v366_v55 = vmul.f32 2.0, %v196_v43 }
 0x10e   :  { %725 = vrsqrt.f32 %v946_v45  ;;  %v964_v56 = vadd.s32 96, %v877_v49  ;;  %vm428_vm3 = vcmp.eq.f32.partialorder %v900_v9, 0.0  ;;  %v429_v44 = vand.u32 2147483648, %v900_v9  ;;  %v673_v62 = vpop.f32.mrf.mxu0  ;;  %v681_v20 = vpop.f32.mrf.mxu1 }
 0x10f   :  { %727 = vrsqrt.f32 %v948_v46  ;;  %v374_v58 = vmul.f32 2.0, %v228_v50  ;;  %vm482_vm4 = vcmp.eq.f32.partialorder %v902_v10, inf  ;;  %v970_v59 = vmax.f32 %v379_v47, 0.0 }
 0x110   :  { %v972_v60 = vmax.f32 %v387_v48, 0.0  ;;  %v974_v61 = vmax.f32 %v384_v52, 0.0  ;;  %vm484_vm5 = vcmp.eq.f32.partialorder %v902_v10, 0.0  ;;  %v485_v63 = vand.u32 2147483648, %v902_v10  ;;  %v231_v22 = vpop.f32.mrf.mxu1 }
 0x111   :  { %vm412_vm6 = vcmp.eq.f32.partialorder %v924_v28, inf  ;;  %v981_v0 = vmax.f32 %v392_v53, 0.0  ;;  %vm414_vm8 = vcmp.eq.f32.partialorder %v924_v28, 0.0  ;;  %v415_v1 = vand.u32 2147483648, %v924_v28 }
 0x112   :  { %729 = vrsqrt.f32 %v970_v59  ;;  %v382_v6 = vsub.f32 %v890_v2, %v366_v55  ;;  %vm468_vm10 = vcmp.eq.f32.partialorder %v926_v29, inf  ;;  %v390_v8 = vsub.f32 %v932_v37, %v374_v58  ;;  %v199_v37 = vpop.f32.mrf.mxu0 }
 0x113   :  { %731 = vrsqrt.f32 %v972_v60  ;;  %v369_v11 = vmul.f32 2.0, %v673_v62  ;;  %vm470_vm11 = vcmp.eq.f32.partialorder %v926_v29, 0.0  ;;  %v471_v15 = vand.u32 2147483648, %v926_v29 }
 0x114   :  { %733 = vrsqrt.f32 %v974_v61  ;;  %v436_v2 = vand.u32 2147483648, %v946_v45  ;;  %vm435_vm14 = vcmp.eq.f32.partialorder %v946_v45, 0.0  ;;  %vm489_vm15 = vcmp.eq.f32.partialorder %v948_v46, inf }
 0x115   :  { %735 = vrsqrt.f32 %v981_v0  ;;  %v492_v18 = vand.u32 2147483648, %v948_v46  ;;  %v1010_v19 = vmax.f32 %v382_v6, 0.0  ;;  %v1018_v30 = vmax.f32 %v390_v8, 0.0 }
 0x116   :  { %v718_v7 = vpop.eup %717  ;;  %v385_v31 = vsub.f32 %v893_v3, %v369_v11  ;;  %v377_v4 = vmul.f32 2.0, %v681_v20  ;;  %v422_v14 = vand.u32 2147483648, %v970_v59  ;;  %v478_v47 = vand.u32 2147483648, %v972_v60 }
 0x117   :  { %v720_v12 = vpop.eup %719  ;;  %v425_v13 = vmul.f32 %v718_v7, %v900_v9  ;;  %737 = vrsqrt.f32 %v1010_v19  ;;  %v367_v58 = vmul.f32 2.0, %v199_v37  ;;  %v513_v23 = vand.u32 2147483648, %v981_v0 }
 0x118   :  { %v481_v16 = vmul.f32 %v720_v12, %v902_v10  ;;  %v722_v25 = vpop.eup %721  ;;  %739 = vrsqrt.f32 %v1018_v30  ;;  %v1067_v53 = vmax.f32 %v385_v31, 0.0  ;;  %v375_v31 = vmul.f32 2.0, %v231_v22 }
 0x119   :  { %v427_v17 = vsel %vm426_vm1, %v900_v9, %v425_v13  ;;  %vm491_vm1 = vcmp.eq.f32.partialorder %v948_v46, 0.0  ;;  %v724_v32 = vpop.eup %723  ;;  %v411_v9 = vmul.f32 %v722_v25, %v924_v28  ;;  %v383_v12 = vsub.f32 %v886_v57, %v367_v58 }
 0x11a   :  { %v430_v26 = vsel %vm428_vm3, %v429_v44, %v427_v17  ;;  %v483_v27 = vsel %vm482_vm4, %v902_v10, %v481_v16  ;;  %v467_v35 = vmul.f32 %v724_v32, %v926_v29  ;;  %vm419_vm3 = vcmp.eq.f32.partialorder %v970_v59, inf }
 0x11b   :  { %v583_v33 = vsel %vm567_vm0, 0.0, %v430_v26  ;;  %v486_v34 = vsel %vm484_vm5, %v485_v63, %v483_v27  ;;  %v413_v10 = vsel %vm412_vm6, %v924_v28, %v411_v9  ;;  %vm421_vm4 = vcmp.eq.f32.partialorder %v970_v59, 0.0  ;;  %v726_v38 = vpop.eup %725 }
 0x11c   :  { %599 = vst [vmem:[%s1230_s4 + $0x10] sm:$0xff] %v583_v33  ;;  %v591_v3 = vsel %vm575_vm2, 0.0, %v486_v34  ;;  %vm475_vm2 = vcmp.eq.f32.partialorder %v972_v60, inf  ;;  %vm574_vm5 = vcmp.eq.s32.totalorder %v936_v39, %v898_v5  ;;  %v416_v40 = vsel %vm414_vm8, %v415_v1, %v413_v10  ;;  %v728_v48 = vpop.eup %727 }
 0x11d   :  { %607 = vst [vmem:[%s1230_s4 + $0x50] sm:$0xff] %v591_v3  ;;  %v469_v43 = vsel %vm468_vm10, %v926_v29, %v467_v35  ;;  %vm477_vm6 = vcmp.eq.f32.partialorder %v972_v60, 0.0  ;;  %vm571_vm0 = vcmp.eq.s32.totalorder %v941_v41, %v898_v5  ;;  %v581_v50 = vsel %vm565_vm7, 0.0, %v416_v40 }
 0x11e   :  { %v472_v28 = vsel %vm470_vm11, %v471_v15, %v469_v43  ;;  %v432_v52 = vmul.f32 %v726_v38, %v946_v45  ;;  %vm579_vm8 = vcmp.eq.s32.totalorder %v944_v42, %v898_v5  ;;  %597 = vst [vmem:[%s1230_s4] sm:$0xff] %v581_v50  ;;  %v488_v44 = vmul.f32 %v728_v48, %v948_v46 }
 0x11f   :  { %v589_v55 = vsel %vm573_vm9, 0.0, %v472_v28  ;;  %v393_v29 = vsub.f32 %v952_v51, %v377_v4  ;;  %vm1231_vm7 = vcmp.eq.f32.partialorder %v946_v45, inf  ;;  %vm454_vm10 = vcmp.eq.f32.partialorder %v974_v61, inf  ;;  %v730_v21 = vpop.eup %729 }
 0x120   :  { %605 = vst [vmem:[%s1230_s4 + $0x40] sm:$0xff] %v589_v55  ;;  %v434_v62 = vsel %vm1231_vm7, %v946_v45, %v432_v52  ;;  %vm456_vm11 = vcmp.eq.f32.partialorder %v974_v61, 0.0  ;;  %741 = vrsqrt.f32 %v1067_v53  ;;  %v490_v51 = vsel %vm489_vm15, %v948_v46, %v488_v44  ;;  %v732_v7 = vpop.eup %731 }
 0x121   :  { %v437_v63 = vsel %vm435_vm14, %v436_v2, %v434_v62  ;;  %v457_v1 = vand.u32 2147483648, %v974_v61  ;;  %vm569_vm9 = vcmp.eq.s32.totalorder %v957_v54, %v898_v5  ;;  %v1094_v6 = vmax.f32 %v393_v29, 0.0  ;;  %v734_v13 = vpop.eup %733 }
 0x122   :  { %v584_v8 = vsel %vm568_vm13, 0.0, %v437_v63  ;;  %v493_v45 = vsel %vm491_vm1, %v492_v18, %v490_v51  ;;  %v418_v11 = vmul.f32 %v730_v21, %v970_v59  ;;  %v474_v16 = vmul.f32 %v732_v7, %v972_v60  ;;  %v736_v46 = vpop.eup %735 }
 0x123   :  { %600 = vst [vmem:[%s1230_s4 + $0x18] sm:$0xff] %v584_v8  ;;  %v592_v15 = vsel %vm576_vm12, 0.0, %v493_v45  ;;  %vm510_vm13 = vcmp.eq.f32.partialorder %v981_v0, inf  ;;  %743 = vrsqrt.f32 %v1094_v6  ;;  %v453_v2 = vmul.f32 %v734_v13, %v974_v61 }
 0x124   :  { %608 = vst [vmem:[%s1230_s4 + $0x58] sm:$0xff] %v592_v15  ;;  %v420_v57 = vsel %vm419_vm3, %v970_v59, %v418_v11  ;;  %vm512_vm12 = vcmp.eq.f32.partialorder %v981_v0, 0.0  ;;  %v476_v18 = vsel %vm475_vm2, %v972_v60, %v474_v16  ;;  %v509_v20 = vmul.f32 %v736_v46, %v981_v0  ;;  %v738_v32 = vpop.eup %737 }
 0x125   :  { %v423_v17 = vsel %vm421_vm4, %v422_v14, %v420_v57  ;;  %v1127_v25 = vmax.f32 %v383_v12, 0.0  ;;  %vm1232_vm14 = vcmp.eq.s32.totalorder %v922_v24, %v898_v5  ;;  %v479_v27 = vsel %vm477_vm6, %v478_v47, %v476_v18  ;;  %v740_v9 = vpop.eup %739 }
 0x126   :  { %v582_v26 = vsel %vm1232_vm14, 0.0, %v423_v17  ;;  %v455_v59 = vsel %vm454_vm10, %v974_v61, %v453_v2  ;;  %v590_v33 = vsel %vm574_vm5, 0.0, %v479_v27  ;;  %v511_v60 = vsel %vm510_vm13, %v981_v0, %v509_v20 }
 0x127   :  { %598 = vst [vmem:[%s1230_s4 + $0x8] sm:$0xff] %v582_v26  ;;  %v458_v24 = vsel %vm456_vm11, %v457_v1, %v455_v59  ;;  %745 = vrsqrt.f32 %v1127_v25  ;;  %606 = vst [vmem:[%s1230_s4 + $0x48] sm:$0xff] %v590_v33  ;;  %v514_v39 = vsel %vm512_vm12, %v513_v23, %v511_v60  ;;  %v439_v61 = vmul.f32 %v738_v32, %v1010_v19 }
 0x128   :  { %v587_v34 = vsel %vm571_vm0, 0.0, %v458_v24  ;;  %vm577_vm15 = vcmp.eq.s32.totalorder %v964_v56, %v898_v5  ;;  %v595_v3 = vsel %vm579_vm8, 0.0, %v514_v39  ;;  %vm440_vm1 = vcmp.eq.f32.partialorder %v1010_v19, inf }
 0x129   :  { %603 = vst [vmem:[%s1230_s4 + $0x30] sm:$0xff] %v587_v34  ;;  %v443_v41 = vand.u32 2147483648, %v1010_v19  ;;  %v391_v0 = vsub.f32 %v929_v36, %v375_v31  ;;  %611 = vst [vmem:[%s1230_s4 + $0x70] sm:$0xff] %v595_v3  ;;  %v441_v35 = vsel %vm440_vm1, %v1010_v19, %v439_v61  ;;  %vm442_vm3 = vcmp.eq.f32.partialorder %v1010_v19, 0.0 }
 0x12a   :  { %v495_v4 = vmul.f32 %v740_v9, %v1018_v30  ;;  %v554_v10 = vadd.s32 56, %v877_v49  ;;  %vm496_vm0 = vcmp.eq.f32.partialorder %v1018_v30, inf  ;;  %v499_v14 = vand.u32 2147483648, %v1018_v30 }
 0x12b   :  { %v444_v42 = vsel %vm442_vm3, %v443_v41, %v441_v35  ;;  %v407_v37 = vmax.f32 %v391_v0, 0.0  ;;  %vm498_vm4 = vcmp.eq.f32.partialorder %v1018_v30, 0.0  ;;  %v562_v43 = vadd.s32 120, %v877_v49 }
 0x12c   :  { %v585_v36 = vsel %vm569_vm9, 0.0, %v444_v42  ;;  %v497_v38 = vsel %vm496_vm0, %v1018_v30, %v495_v4  ;;  %vm461_vm2 = vcmp.eq.f32.partialorder %v1067_v53, inf  ;;  %v464_v30 = vand.u32 2147483648, %v1067_v53 }
 0x12d   :  { %v742_v40 = vpop.eup %741  ;;  %601 = vst [vmem:[%s1230_s4 + $0x20] sm:$0xff] %v585_v36  ;;  %v500_v19 = vsel %vm498_vm4, %v499_v14, %v497_v38  ;;  %747 = vrsqrt.f32 %v407_v37  ;;  %vm572_vm5 = vcmp.eq.s32.totalorder %v554_v10, %v898_v5  ;;  %vm463_vm6 = vcmp.eq.f32.partialorder %v1067_v53, 0.0 }
 0x12e   :  { %v593_v47 = vsel %vm577_vm15, 0.0, %v500_v19  ;;  %v460_v54 = vmul.f32 %v742_v40, %v1067_v53  ;;  %vm580_vm8 = vcmp.eq.s32.totalorder %v562_v43, %v898_v5  ;;  %vm517_vm7 = vcmp.eq.f32.partialorder %v1094_v6, inf }
 0x12f   :  { %609 = vst [vmem:[%s1230_s4 + $0x60] sm:$0xff] %v593_v47  ;;  %v520_v55 = vand.u32 2147483648, %v1094_v6  ;;  %v552_v44 = vadd.s32 40, %v877_v49  ;;  %vm519_vm10 = vcmp.eq.f32.partialorder %v1094_v6, 0.0  ;;  %vm447_vm11 = vcmp.eq.f32.partialorder %v1127_v25, inf }
 0x130   :  { %v744_v48 = vpop.eup %743  ;;  %v462_v50 = vsel %vm461_vm2, %v1067_v53, %v460_v54  ;;  %v450_v63 = vand.u32 2147483648, %v1127_v25  ;;  %vm449_vm13 = vcmp.eq.f32.partialorder %v1127_v25, 0.0  ;;  %vm503_vm12 = vcmp.eq.f32.partialorder %v407_v37, inf }
 0x131   :  { %v465_v28 = vsel %vm463_vm6, %v464_v30, %v462_v50  ;;  %v516_v56 = vmul.f32 %v744_v48, %v1094_v6  ;;  %vm570_vm9 = vcmp.eq.s32.totalorder %v552_v44, %v898_v5  ;;  %v506_v11 = vand.u32 2147483648, %v407_v37 }
 0x132   :  { %v588_v52 = vsel %vm572_vm5, 0.0, %v465_v28  ;;  %vm505_vm15 = vcmp.eq.f32.partialorder %v407_v37, 0.0 }
 0x133   :  { %604 = vst [vmem:[%s1230_s4 + $0x38] sm:$0xff] %v588_v52  ;;  %v518_v29 = vsel %vm517_vm7, %v1094_v6, %v516_v56  ;;  %v560_v6 = vadd.s32 104, %v877_v49 }
 0x134   :  { %v746_v53 = vpop.eup %745  ;;  %v521_v58 = vsel %vm519_vm10, %v520_v55, %v518_v29 }
 0x135   :  { %v596_v62 = vsel %vm580_vm8, 0.0, %v521_v58  ;;  %v446_v21 = vmul.f32 %v746_v53, %v1127_v25  ;;  %vm578_vm14 = vcmp.eq.s32.totalorder %v560_v6, %v898_v5 }
 0x136   :  { %612 = vst [vmem:[%s1230_s4 + $0x78] sm:$0xff] %v596_v62 }
 0x137   :  { %v448_v51 = vsel %vm447_vm11, %v1127_v25, %v446_v21 }
 0x138   :  { %v451_v1 = vsel %vm449_vm13, %v450_v63, %v448_v51 }
 0x139   :  { %v586_v7 = vsel %vm570_vm9, 0.0, %v451_v1 }
 0x13a   :  { %v748_v8 = vpop.eup %747  ;;  %602 = vst [vmem:[%s1230_s4 + $0x28] sm:$0xff] %v586_v7 }
 0x13b   :  { %v502_v45 = vmul.f32 %v748_v8, %v407_v37 }
 0x13d   :  { %v504_v12 = vsel %vm503_vm12, %v407_v37, %v502_v45 }
 0x13e   :  { %v507_v13 = vsel %vm505_vm15, %v506_v11, %v504_v12 }
 0x13f   :  { %v594_v15 = vsel %vm578_vm14, 0.0, %v507_v13 }
 0x140   :  { %610 = vst [vmem:[%s1230_s4 + $0x68] sm:$0xff] %v594_v15 }

// kernel: transform_pred_3d.2
= control target key start
LH: loop header
LB: loop body
LE: loop exit
PB: predicated region body
PF: predicated region fallthrough
CT: control target
= control target key end

     0   :  { %12 = vsyncpa [#allocation3], 0  ;;  %s865_s21 = smov [#allocation2]   ;;  %s1066_s0 = inlined_call_operand.vmem [shape: bf16[128,128], index: 0, kind: input, shape index: {}]   ;;  %s1067_s1 = inlined_call_operand.vmem [shape: bf16[128,128], index: 1, kind: input, shape index: {}]   ;;  %s1068_s2 = inlined_call_operand.vmem [shape: f32[1,128], index: 2, kind: input, shape index: {}]   ;;  %s1069_s3 = inlined_call_operand.hbm [shape: bf16[128,128], index: 3, kind: input, shape index: {}]   ;;  %s1070_s4 = inlined_call_operand.vmem [shape: f32[1,128], index: 4, kind: input, shape index: {}]   ;;  %s1071_s5 = inlined_call_operand.vmem [shape: bf16[128,128], index: 5, kind: output, shape index: {0}]   ;;  %s1072_s6 = inlined_call_operand.vmem [shape: f32[128,1], index: 6, kind: output, shape index: {1}]  }
   0x1   :  { %s24_s22 = sshll.u32 %s865_s21, 4  ;;  %s25_s22 = int_to_ptr.vmem [resolvable:$true] %s24_s22 }
   0x2   :  { %s851_s23 = scalar_lea.vmem %s25_s22, 1024  ;;  %p856_p1 = scmp.lt.s32.totalorder %s25_s22, %s25_s22 }
   0x3   :  { %p852_p0 = scmp.ne.s32.totalorder %s25_s22, %s851_s23  ;;  %p857_p2 = scmp.lt.s32.totalorder %s851_s23, %s851_s23 }
   0x5   :  { %p858_p3 = por %p857_p2, %p856_p1 }
   0x7   :  { %p859_p4 = pnand %p858_p3, %p852_p0 }
   0x9   :  { %862 = shalt.err (!%p859_p4)
}
   0xa   :  { %s866_s24 = smov 64   ;;  %s867_s25 = smov 4  }
   0xb   :  { %30 = dma.hbm_to_vmem [thread:$0]  %s1069_s3, 1024, %s25_s22, [#allocation3], %s866_s24, %s866_s24, %s867_s25  }
   0xc   :  { %863 = dma.done.wait [#allocation3], 1024  }
   0xd   :  { %864 = vsyncadd [#allocation3], 4294966272  ;;  %v819_v0 = vld [vmem:[%s1067_s1 + $0x38] sm:$0xff]   ;;  %v820_v1 = vld [vmem:[%s1067_s1 + $0x30] sm:$0xff]   ;;  %vm509_vm0 = vcmask 7168  }
   0xe   :  { %752 = vmatprep.subr.bf16.mxu0 %v819_v0  ;;  %v821_v2 = vld [vmem:[%s1067_s1 + $0x28] sm:$0xff]   ;;  %v822_v3 = vld [vmem:[%s1067_s1 + $0x20] sm:$0xff]   ;;  %v823_v5 = vld [vmem:[%s1067_s1 + $0x18] sm:$0xff]  }
   0xf   :  { %753 = vmatpush3.bf16.msra.mxu0 %v819_v0  ;;  %v827_v4 = vld [vmem:[%s1066_s0] sm:$0xff]   ;;  %v824_v6 = vld [vmem:[%s1067_s1 + $0x10] sm:$0xff]   ;;  %v835_v7 = vld [vmem:[#allocation2 + $0x38] sm:$0xff]  }
  0x10   :  { %754 = vmatprep.subr.bf16.mxu0 %v820_v1  ;;  %768 = vmatprep.mubr.bf16.mxu0 %v827_v4  ;;  %v836_v8 = vld [vmem:[#allocation2 + $0x30] sm:$0xff]   ;;  %v825_v9 = vld [vmem:[%s1067_s1 + $0x8] sm:$0xff]   ;;  %v826_v11 = vld [vmem:[%s1067_s1] sm:$0xff]  }
  0x11   :  { %784 = vmatprep.subr.bf16.mxu1 %v835_v7  ;;  %v837_v10 = vld [vmem:[#allocation2 + $0x28] sm:$0xff]   ;;  %v838_v12 = vld [vmem:[#allocation2 + $0x20] sm:$0xff]   ;;  %v839_v13 = vld [vmem:[#allocation2 + $0x18] sm:$0xff]  }
  0x12   :  { %785 = vmatpush3.bf16.msra.mxu1 %v835_v7  ;;  %v828_v14 = vld [vmem:[%s1066_s0 + $0x8] sm:$0xff]   ;;  %v829_v15 = vld [vmem:[%s1066_s0 + $0x10] sm:$0xff]   ;;  %v830_v16 = vld [vmem:[%s1066_s0 + $0x18] sm:$0xff]  }
  0x13   :  { %755 = vmatpush3.bf16.msra.mxu0 %v820_v1  ;;  %786 = vmatprep.subr.bf16.mxu1 %v836_v8  ;;  %v831_v17 = vld [vmem:[%s1066_s0 + $0x20] sm:$0xff]   ;;  %v832_v18 = vld [vmem:[%s1066_s0 + $0x28] sm:$0xff]   ;;  %v833_v19 = vld [vmem:[%s1066_s0 + $0x30] sm:$0xff]  }
  0x14   :  { %756 = vmatprep.subr.bf16.mxu0 %v821_v2  ;;  %v834_v20 = vld [vmem:[%s1066_s0 + $0x38] sm:$0xff]   ;;  %v840_v21 = vld [vmem:[#allocation2 + $0x10] sm:$0xff]   ;;  %v841_v22 = vld [vmem:[#allocation2 + $0x8] sm:$0xff]  }
  0x15   :  { %v842_v23 = vld [vmem:[#allocation2] sm:$0xff]  }
  0x16   :  { %787 = vmatpush3.bf16.msra.mxu1 %v836_v8  ;;  %v615_v26 = vld [vmem:[%s1068_s2] ss:$0 sm:$0xff] }
  0x17   :  { %757 = vmatpush3.bf16.msra.mxu0 %v821_v2  ;;  %788 = vmatprep.subr.bf16.mxu1 %v837_v10 }
  0x18   :  { %758 = vmatprep.subr.bf16.mxu0 %v822_v3 }
  0x1a   :  { %789 = vmatpush3.bf16.msra.mxu1 %v837_v10 }
  0x1b   :  { %759 = vmatpush3.bf16.msra.mxu0 %v822_v3  ;;  %790 = vmatprep.subr.bf16.mxu1 %v838_v12 }
  0x1c   :  { %760 = vmatprep.subr.bf16.mxu0 %v823_v5 }
  0x1e   :  { %791 = vmatpush3.bf16.msra.mxu1 %v838_v12 }
  0x1f   :  { %761 = vmatpush3.bf16.msra.mxu0 %v823_v5  ;;  %792 = vmatprep.subr.bf16.mxu1 %v839_v13 }
  0x20   :  { %762 = vmatprep.subr.bf16.mxu0 %v824_v6 }
  0x22   :  { %793 = vmatpush3.bf16.msra.mxu1 %v839_v13 }
  0x23   :  { %763 = vmatpush3.bf16.msra.mxu0 %v824_v6  ;;  %794 = vmatprep.subr.bf16.mxu1 %v840_v21 }
  0x24   :  { %764 = vmatprep.subr.bf16.mxu0 %v825_v9 }
  0x26   :  { %795 = vmatpush3.bf16.msra.mxu1 %v840_v21 }
  0x27   :  { %765 = vmatpush3.bf16.msra.mxu0 %v825_v9  ;;  %796 = vmatprep.subr.bf16.mxu1 %v841_v22 }
  0x28   :  { %766 = vmatprep.subr.bf16.mxu0 %v826_v11 }
  0x2a   :  { %797 = vmatpush3.bf16.msra.mxu1 %v841_v22 }
  0x2b   :  { %767 = vmatpush3.bf16.msra.mxu0 %v826_v11  ;;  %798 = vmatprep.subr.bf16.mxu1 %v842_v23 }
  0x2e   :  { %769 = vmatmul.mubr.bf16.vlgmr.msra.gmra.mxu0 %v828_v14  ;;  %799 = vmatpush3.bf16.msra.mxu1 %v842_v23 }
  0x2f   :  { %772 = vmatprep.mubr.bf16.mxu0 %v829_v15 }
  0x36   :  { %773 = vmatmul.mubr.bf16.gmra.mxu0 %v830_v16 }
  0x37   :  { %776 = vmatprep.mubr.bf16.mxu0 %v831_v17  ;;  %v960_v17 = vld [vmem:[%s1070_s4] ss:$0 sm:$0xff] }
  0x3e   :  { %777 = vmatmul.mubr.bf16.gmra.mxu0 %v832_v18 }
  0x3f   :  { %780 = vmatprep.mubr.bf16.mxu0 %v833_v19 }
  0x46   :  { %781 = vmatmul.mubr.bf16.gmra.mxu0 %v834_v20 }
  0xee   :  { %v770_v24 = vpop.f32.mrf.mxu0 }
  0xef   :  { %v215_v30 = vadd.f32 %v770_v24, %v615_v26 }
  0xf0   :  { %v206_v25 = vpop.f32.mrf.mxu0 }
  0xf1   :  { %v207_v28 = vadd.f32 %v615_v26, %v206_v25  ;;  %v271_v37 = vmax.f32 %v215_v30, 0.0 }
  0xf2   :  { %v771_v27 = vpop.f32.mrf.mxu0 }
  0xf3   :  { %v218_v29 = vadd.f32 %v771_v27, %v615_v26  ;;  %v269_v35 = vmax.f32 %v207_v28, 0.0 }
  0xf4   :  { %v209_v31 = vpop.f32.mrf.mxu0 }
  0xf5   :  { %v210_v32 = vadd.f32 %v615_v26, %v209_v31  ;;  %v272_v33 = vmax.f32 %v218_v29, 0.0 }
  0xf6   :  { %v774_v34 = vpop.f32.mrf.mxu0 }
  0xf7   :  { %v270_v36 = vmax.f32 %v210_v32, 0.0  ;;  %v286_v40 = vpack.c.bf16 %v272_v33, %v271_v37  ;;  %v231_v44 = vadd.f32 %v774_v34, %v615_v26 }
  0xf8   :  { %v222_v38 = vpop.f32.mrf.mxu0 }
  0xf9   :  { %v285_v39 = vpack.c.bf16 %v270_v36, %v269_v35  ;;  %v223_v42 = vadd.f32 %v615_v26, %v222_v38  ;;  %v275_v51 = vmax.f32 %v231_v44, 0.0 }
  0xfa   :  { %v775_v41 = vpop.f32.mrf.mxu0 }
  0xfb   :  { %v234_v43 = vadd.f32 %v775_v41, %v615_v26  ;;  %800 = vmatprep.mubr.bf16.mxu1 %v285_v39  ;;  %v273_v49 = vmax.f32 %v223_v42, 0.0 }
  0xfc   :  { %v225_v45 = vpop.f32.mrf.mxu0  ;;  %801 = vmatmul.mubr.bf16.vlgmr.msra.gmra.mxu1 %v286_v40 }
  0xfd   :  { %v226_v46 = vadd.f32 %v615_v26, %v225_v45  ;;  %v276_v47 = vmax.f32 %v234_v43, 0.0 }
  0xfe   :  { %v778_v48 = vpop.f32.mrf.mxu0 }
  0xff   :  { %v274_v50 = vmax.f32 %v226_v46, 0.0  ;;  %v288_v54 = vpack.c.bf16 %v276_v47, %v275_v51  ;;  %v247_v58 = vadd.f32 %v778_v48, %v615_v26 }
 0x100   :  { %v238_v52 = vpop.f32.mrf.mxu0 }
 0x101   :  { %v287_v53 = vpack.c.bf16 %v274_v50, %v273_v49  ;;  %v239_v56 = vadd.f32 %v615_v26, %v238_v52  ;;  %v279_v1 = vmax.f32 %v247_v58, 0.0 }
 0x102   :  { %v779_v55 = vpop.f32.mrf.mxu0 }
 0x103   :  { %v250_v57 = vadd.f32 %v779_v55, %v615_v26  ;;  %804 = vmatprep.mubr.bf16.mxu1 %v287_v53  ;;  %v277_v63 = vmax.f32 %v239_v56, 0.0 }
 0x104   :  { %v241_v59 = vpop.f32.mrf.mxu0  ;;  %805 = vmatmul.mubr.bf16.gmra.mxu1 %v288_v54 }
 0x105   :  { %v242_v60 = vadd.f32 %v615_v26, %v241_v59  ;;  %v280_v61 = vmax.f32 %v250_v57, 0.0 }
 0x106   :  { %v782_v62 = vpop.f32.mrf.mxu0 }
 0x107   :  { %v278_v0 = vmax.f32 %v242_v60, 0.0  ;;  %v290_v4 = vpack.c.bf16 %v280_v61, %v279_v1  ;;  %v263_v8 = vadd.f32 %v782_v62, %v615_v26 }
 0x108   :  { %v254_v2 = vpop.f32.mrf.mxu0 }
 0x109   :  { %v289_v3 = vpack.c.bf16 %v278_v0, %v277_v63  ;;  %v255_v6 = vadd.f32 %v615_v26, %v254_v2  ;;  %v283_v14 = vmax.f32 %v263_v8, 0.0 }
 0x10a   :  { %v783_v5 = vpop.f32.mrf.mxu0 }
 0x10b   :  { %v266_v7 = vadd.f32 %v783_v5, %v615_v26  ;;  %808 = vmatprep.mubr.bf16.mxu1 %v289_v3  ;;  %v281_v12 = vmax.f32 %v255_v6, 0.0 }
 0x10c   :  { %v257_v9 = vpop.f32.mrf.mxu0  ;;  %809 = vmatmul.mubr.bf16.gmra.mxu1 %v290_v4 }
 0x10d   :  { %v258_v10 = vadd.f32 %v615_v26, %v257_v9  ;;  %v284_v11 = vmax.f32 %v266_v7, 0.0 }
 0x10f   :  { %v282_v13 = vmax.f32 %v258_v10, 0.0  ;;  %v292_v16 = vpack.c.bf16 %v284_v11, %v283_v14 }
 0x111   :  { %v291_v15 = vpack.c.bf16 %v282_v13, %v281_v12 }
 0x113   :  { %812 = vmatprep.mubr.bf16.mxu1 %v291_v15 }
 0x114   :  { %813 = vmatmul.mubr.bf16.gmra.mxu1 %v292_v16 }
 0x1bc   :  { %v802_v18 = vpop.f32.mrf.mxu1 }
 0x1bd   :  { %v407_v19 = vadd.f32 %v802_v18, %v960_v17 }
 0x1be   :  { %v398_v20 = vpop.f32.mrf.mxu1 }
 0x1bf   :  { %v399_v21 = vadd.f32 %v960_v17, %v398_v20  ;;  %v463_v22 = vmul.f32 %v407_v19, %v407_v19 }
 0x1c0   :  { %v803_v23 = vpop.f32.mrf.mxu1 }
 0x1c1   :  { %v410_v24 = vadd.f32 %v803_v23, %v960_v17  ;;  %481 = vadd.xlane.f32.xlu1 %v463_v22  ;;  %v461_v25 = vmul.f32 %v399_v21, %v399_v21 }
 0x1c2   :  { %v401_v26 = vpop.f32.mrf.mxu1 }
 0x1c3   :  { %v681_v27 = vpack.c.bf16 %v410_v24, %v407_v19  ;;  %v402_v28 = vadd.f32 %v960_v17, %v401_v26  ;;  %477 = vadd.xlane.f32.xlu0 %v461_v25  ;;  %v464_v29 = vmul.f32 %v410_v24, %v410_v24 }
 0x1c4   :  { %v806_v30 = vpop.f32.mrf.mxu1 }
 0x1c5   :  { %713 = vst [vmem:[%s1071_s5 + $0x8] sm:$0xff] %v681_v27   ;;  %v676_v31 = vpack.c.bf16 %v402_v28, %v399_v21  ;;  %v423_v32 = vadd.f32 %v806_v30, %v960_v17  ;;  %483 = vadd.xlane.f32.xlu1 %v464_v29  ;;  %v462_v33 = vmul.f32 %v402_v28, %v402_v28 }
 0x1c6   :  { %v414_v34 = vpop.f32.mrf.mxu1 }
 0x1c7   :  { %677 = vst [vmem:[%s1071_s5] sm:$0xff] %v676_v31   ;;  %479 = vadd.xlane.f32.xlu0 %v462_v33  ;;  %v415_v36 = vadd.f32 %v960_v17, %v414_v34  ;;  %v467_v38 = vmul.f32 %v423_v32, %v423_v32 }
 0x1c8   :  { %v807_v35 = vpop.f32.mrf.mxu1 }
 0x1c9   :  { %v426_v37 = vadd.f32 %v807_v35, %v960_v17  ;;  %v465_v46 = vmul.f32 %v415_v36, %v415_v36 }
 0x1ca   :  { %v417_v39 = vpop.f32.mrf.mxu1 }
 0x1cb   :  { %v691_v40 = vpack.c.bf16 %v426_v37, %v423_v32  ;;  %v418_v41 = vadd.f32 %v960_v17, %v417_v39  ;;  %489 = vadd.xlane.f32.xlu0 %v467_v38  ;;  %v468_v42 = vmul.f32 %v426_v37, %v426_v37 }
 0x1cc   :  { %v810_v43 = vpop.f32.mrf.mxu1 }
 0x1cd   :  { %715 = vst [vmem:[%s1071_s5 + $0x18] sm:$0xff] %v691_v40   ;;  %v686_v44 = vpack.c.bf16 %v418_v41, %v415_v36  ;;  %v439_v45 = vadd.f32 %v810_v43, %v960_v17  ;;  %491 = vadd.xlane.f32.xlu1 %v468_v42  ;;  %v466_v48 = vmul.f32 %v418_v41, %v418_v41 }
 0x1ce   :  { %v430_v47 = vpop.f32.mrf.mxu1 }
 0x1cf   :  { %714 = vst [vmem:[%s1071_s5 + $0x10] sm:$0xff] %v686_v44   ;;  %485 = vadd.xlane.f32.xlu0 %v465_v46  ;;  %v431_v50 = vadd.f32 %v960_v17, %v430_v47  ;;  %v471_v52 = vmul.f32 %v439_v45, %v439_v45 }
 0x1d0   :  { %v811_v49 = vpop.f32.mrf.mxu1 }
 0x1d1   :  { %v442_v51 = vadd.f32 %v811_v49, %v960_v17  ;;  %487 = vadd.xlane.f32.xlu1 %v466_v48  ;;  %v469_v59 = vmul.f32 %v431_v50, %v431_v50 }
 0x1d2   :  { %v433_v53 = vpop.f32.mrf.mxu1 }
 0x1d3   :  { %v701_v54 = vpack.c.bf16 %v442_v51, %v439_v45  ;;  %v434_v55 = vadd.f32 %v960_v17, %v433_v53  ;;  %497 = vadd.xlane.f32.xlu0 %v471_v52  ;;  %v472_v56 = vmul.f32 %v442_v51, %v442_v51 }
 0x1d4   :  { %v814_v57 = vpop.f32.mrf.mxu1 }
 0x1d5   :  { %717 = vst [vmem:[%s1071_s5 + $0x28] sm:$0xff] %v701_v54   ;;  %v696_v58 = vpack.c.bf16 %v434_v55, %v431_v50  ;;  %499 = vadd.xlane.f32.xlu1 %v472_v56  ;;  %v470_v62 = vmul.f32 %v434_v55, %v434_v55  ;;  %v455_v0 = vadd.f32 %v814_v57, %v960_v17 }
 0x1d6   :  { %v446_v60 = vpop.f32.mrf.mxu1 }
 0x1d7   :  { %716 = vst [vmem:[%s1071_s5 + $0x20] sm:$0xff] %v696_v58   ;;  %v447_v61 = vadd.f32 %v960_v17, %v446_v60  ;;  %493 = vadd.xlane.f32.xlu0 %v469_v59  ;;  %v475_v8 = vmul.f32 %v455_v0, %v455_v0 }
 0x1d8   :  { %v815_v63 = vpop.f32.mrf.mxu1 }
 0x1d9   :  { %v458_v1 = vadd.f32 %v815_v63, %v960_v17  ;;  %495 = vadd.xlane.f32.xlu1 %v470_v62  ;;  %v473_v2 = vmul.f32 %v447_v61, %v447_v61 }
 0x1da   :  { %v449_v3 = vpop.f32.mrf.mxu1 }
 0x1db   :  { %v711_v4 = vpack.c.bf16 %v458_v1, %v455_v0  ;;  %v450_v5 = vadd.f32 %v960_v17, %v449_v3  ;;  %501 = vadd.xlane.f32.xlu0 %v473_v2  ;;  %v476_v9 = vmul.f32 %v458_v1, %v458_v1 }
 0x1dd   :  { %719 = vst [vmem:[%s1071_s5 + $0x38] sm:$0xff] %v711_v4   ;;  %v706_v6 = vpack.c.bf16 %v450_v5, %v447_v61  ;;  %v474_v7 = vmul.f32 %v450_v5, %v450_v5 }
 0x1df   :  { %718 = vst [vmem:[%s1071_s5 + $0x30] sm:$0xff] %v706_v6   ;;  %503 = vadd.xlane.f32.xlu1 %v474_v7  ;;  %505 = vadd.xlane.f32.xlu0 %v475_v8 }
 0x1e3   :  { %507 = vadd.xlane.f32.xlu1 %v476_v9 }
 0x24a   :  { %v482_v10 = vpop.xlane.xlu1 %481 }
 0x24b   :  { %512 = vst.msk [vmem:[%s1072_s6 + $0x10] sm:$0xff] %vm509_vm0, %v482_v10 }
 0x24c   :  { %v478_v11 = vpop.xlane.xlu0 %477 }
 0x24d   :  { %510 = vst.msk [vmem:[%s1072_s6] sm:$0xff] %vm509_vm0, %v478_v11 }
 0x24e   :  { %v484_v12 = vpop.xlane.xlu1 %483 }
 0x24f   :  { %513 = vst.msk [vmem:[%s1072_s6 + $0x18] sm:$0xff] %vm509_vm0, %v484_v12 }
 0x250   :  { %v480_v13 = vpop.xlane.xlu0 %479 }
 0x251   :  { %511 = vst.msk [vmem:[%s1072_s6 + $0x8] sm:$0xff] %vm509_vm0, %v480_v13 }
 0x254   :  { %v490_v14 = vpop.xlane.xlu0 %489 }
 0x255   :  { %516 = vst.msk [vmem:[%s1072_s6 + $0x30] sm:$0xff] %vm509_vm0, %v490_v14 }
 0x256   :  { %v492_v15 = vpop.xlane.xlu1 %491 }
 0x257   :  { %517 = vst.msk [vmem:[%s1072_s6 + $0x38] sm:$0xff] %vm509_vm0, %v492_v15 }
 0x258   :  { %v486_v16 = vpop.xlane.xlu0 %485 }
 0x259   :  { %514 = vst.msk [vmem:[%s1072_s6 + $0x20] sm:$0xff] %vm509_vm0, %v486_v16 }
 0x25a   :  { %v488_v17 = vpop.xlane.xlu1 %487 }
 0x25b   :  { %515 = vst.msk [vmem:[%s1072_s6 + $0x28] sm:$0xff] %vm509_vm0, %v488_v17 }
 0x25c   :  { %v498_v18 = vpop.xlane.xlu0 %497 }
 0x25d   :  { %520 = vst.msk [vmem:[%s1072_s6 + $0x50] sm:$0xff] %vm509_vm0, %v498_v18 }
 0x25e   :  { %v500_v19 = vpop.xlane.xlu1 %499 }
 0x25f   :  { %521 = vst.msk [vmem:[%s1072_s6 + $0x58] sm:$0xff] %vm509_vm0, %v500_v19 }
 0x260   :  { %v494_v20 = vpop.xlane.xlu0 %493 }
 0x261   :  { %518 = vst.msk [vmem:[%s1072_s6 + $0x40] sm:$0xff] %vm509_vm0, %v494_v20 }
 0x262   :  { %v496_v21 = vpop.xlane.xlu1 %495 }
 0x263   :  { %519 = vst.msk [vmem:[%s1072_s6 + $0x48] sm:$0xff] %vm509_vm0, %v496_v21 }
 0x264   :  { %v502_v22 = vpop.xlane.xlu0 %501 }
 0x265   :  { %522 = vst.msk [vmem:[%s1072_s6 + $0x60] sm:$0xff] %vm509_vm0, %v502_v22 }
 0x268   :  { %v504_v23 = vpop.xlane.xlu1 %503  ;;  %v506_v24 = vpop.xlane.xlu0 %505 }
 0x269   :  { %523 = vst.msk [vmem:[%s1072_s6 + $0x68] sm:$0xff] %vm509_vm0, %v504_v23  ;;  %524 = vst.msk [vmem:[%s1072_s6 + $0x70] sm:$0xff] %vm509_vm0, %v506_v24 }
 0x26c   :  { %v508_v25 = vpop.xlane.xlu1 %507 }
 0x26d   :  { %525 = vst.msk [vmem:[%s1072_s6 + $0x78] sm:$0xff] %vm509_vm0, %v508_v25 }
 0x26e   :  { %614 = vsyncpa [#allocation3], 1 }

</bundles_post_ra>
